<compile_context>
chip_gen: v7x
topology: tpu7x:2x2x1
jax: 0.10.0
libtpu: 0.0.40
codegen_flags: <defaults>
</compile_context>

<pallas_src>
import functools

import jax
import jax.numpy as jnp
from jax import lax
from jax.experimental import pallas as pl
from jax.experimental.pallas import tpu as pltpu


_SUBLANES = 8
_LANES = 128
_VMEM_LIMIT_BYTES = 32 * 1024 * 1024


def _round_up(x: int, m: int) -> int:
    return (x + m - 1) // m * m


def _default_block_bytes() -> int:
    """Per-block DMA target.  4 MiB double-buffers to 8 MiB (fits v5e's 16 MiB
    scoped-VMEM default with headroom); on a v7x-class core (64 MiB VMEM,
    3.2 TB/s HBM) use 8 MiB blocks to amortize the ~0.35 us/step overhead."""
    try:
        info = pltpu.get_tpu_info()
        if info.vmem_capacity_bytes <= 64 * 1024 * 1024:  # v7x-class TensorCore
            return 8 * 1024 * 1024
    except Exception:
        pass
    return 4 * 1024 * 1024


def _n3_factor_kernel(x_ref, o_ref, *, tile_rows, tiles_per_core, total_rows):
    """Accumulate sum_rows(|x|^3) collapsed to an (8, dim) partial per core.

    Grid = (num_cores, tiles_per_core).  The leading axis is 'parallel' so on a
    2-TensorCore chip each core reduces its half of the row tiles into its own
    resident output block; the trailing axis is the carried reduction.
    """
    c = pl.program_id(0)
    i = pl.program_id(1)

    @pl.when(i == 0)
    def _():
        o_ref[...] = jnp.zeros_like(o_ref)

    x = x_ref[...].astype(jnp.float32)  # (tile_rows, dim), cast in-kernel

    # Mask rows past the end of the factor (ragged last tile) and fully
    # duplicated clamped tiles (odd tile count with the 2-core split).
    nominal_tile = c * tiles_per_core + i
    row = lax.broadcasted_iota(jnp.int32, (tile_rows, 1), 0)
    valid = (nominal_tile * tile_rows + row) < total_rows
    x = jnp.where(valid, x, 0.0)

    a = jnp.abs(x)
    cube = a * a * a
    # Collapse rows down to 8 sublanes with pure VPU adds; the single tiny
    # cross-lane reduction happens in the wrapper epilogue.
    partial = jnp.sum(cube.reshape(tile_rows // _SUBLANES, _SUBLANES, -1), axis=0)
    o_ref[...] += partial[None]


def _n3_factor_partials(f: jax.Array, block_bytes: int) -> jax.Array:
    """Per-core (num_cores, 8, dim) unscaled partial sums of |f|^3."""
    rows, dim = f.shape

    # Largest row tile whose VMEM footprint (lanes padded to 128, native dtype)
    # stays near block_bytes; always a multiple of 8 sublanes, never (much)
    # bigger than the factor itself.
    dim_padded = _round_up(dim, _LANES)
    bytes_per_row = dim_padded * f.dtype.itemsize
    tile_rows = max(_SUBLANES,
                    (block_bytes // bytes_per_row) // _SUBLANES * _SUBLANES)
    tile_rows = min(tile_rows, _round_up(rows, _SUBLANES))

    n_tiles = pl.cdiv(rows, tile_rows)
    num_cores = min(2, n_tiles)            # v7x: 2 TCs; v5e/v6e just serialize
    tiles_per_core = pl.cdiv(n_tiles, num_cores)

    def in_index_map(c, i):
        # Clamp so an overhanging last step of core 1 re-reads a valid tile
        # (the kernel masks it to zero) instead of issuing an OOB block.
        return (jnp.minimum(c * tiles_per_core + i, n_tiles - 1), 0)

    kernel = functools.partial(
        _n3_factor_kernel,
        tile_rows=tile_rows,
        tiles_per_core=tiles_per_core,
        total_rows=rows,
    )

    cost = pl.CostEstimate(
        flops=6 * rows * dim,
        transcendentals=0,
        bytes_accessed=int(rows * dim * f.dtype.itemsize
                           + num_cores * _SUBLANES * dim * 4),
    )

    return pl.pallas_call(
        kernel,
        out_shape=jax.ShapeDtypeStruct((num_cores, _SUBLANES, dim), jnp.float32),
        grid_spec=pltpu.PrefetchScalarGridSpec(
            num_scalar_prefetch=0,
            grid=(num_cores, tiles_per_core),
            in_specs=[pl.BlockSpec((tile_rows, dim), in_index_map)],
            out_specs=pl.BlockSpec((1, _SUBLANES, dim), lambda c, i: (c, 0, 0)),
        ),
        compiler_params=pltpu.CompilerParams(
            dimension_semantics=("parallel", "arbitrary"),
            vmem_limit_bytes=_VMEM_LIMIT_BYTES,
        ),
        cost_estimate=cost,
    )(f)


def n3_regularizer(factors, weight: float, *, max_block_bytes=None) -> jax.Array:
    """JAX/Pallas equivalent of N3(weight).forward(factors)."""
    block_bytes = max_block_bytes or _default_block_bytes()
    total = jnp.zeros((), jnp.float32)
    for f in factors:
        f = jnp.asarray(f)
        assert f.ndim == 2, "N3 expects 2D factors (rows, dim)"
        if f.size == 0:
            continue
        _, dim = f.shape
        partials = _n3_factor_partials(f, block_bytes)
        # Tiny epilogue: reduce (num_cores, 8, dim) and apply weight / dim.
        total = total + (float(weight) / float(dim)) * jnp.sum(partials)
    return total


def _reference(factors, weight):
    norm = jnp.float32(0.0)
    for factor in factors:
        _, dim = factor.shape
        norm = norm + weight * jnp.sum(jnp.abs(factor.astype(jnp.float32)) ** 3) / dim
    return norm


if __name__ == "__main__":
    key = jax.random.PRNGKey(0)
    k1, k2, k3, k4 = jax.random.split(key, 4)
    weight = 0.05

    # Test 1: small KBC-style (lhs, rel, rhs) factors — ragged rows + mixed dtype
    # (bf16 stays bf16 on the wire; the kernel casts in VMEM).
    factors = (
        jax.random.normal(k1, (16, 32), dtype=jnp.float32),
        jax.random.normal(k2, (15, 32), dtype=jnp.float32),
        jax.random.normal(k3, (16, 32), dtype=jnp.bfloat16),
    )
    result = jax.block_until_ready(n3_regularizer(factors, weight))
    ref = jax.block_until_ready(_reference(factors, weight))
    assert jnp.allclose(result, ref, rtol=1e-5, atol=1e-5), (result, ref)

    # Test 2: force the multi-tile path (odd tile count -> 2-core split with a
    # clamped/masked overhang tile and a ragged last tile) via a small block cap.
    big = (jax.random.normal(k4, (600, 256), dtype=jnp.float32),)
    result2 = jax.block_until_ready(
        n3_regularizer(big, weight, max_block_bytes=128 * 1024))
    ref2 = jax.block_until_ready(_reference(big, weight))
    assert jnp.allclose(result2, ref2, rtol=1e-5, atol=1e-5), (result2, ref2)

    print("KERNEL_OK")
</pallas_src>

<mosaic_0001>
module attributes {stable_mosaic.version = 11 : i64} {
  func.func @_n3_factor_kernel(%arg0: i32, %arg1: i32, %arg2: memref<16x32xf32, #tpu.memory_space<vmem>>, %arg3: memref<1x8x32xf32, #tpu.memory_space<vmem>>) attributes {dimension_semantics = [#tpu.dimension_semantics<parallel>, #tpu.dimension_semantics<arbitrary>], iteration_bounds = array<i64: 1, 1>, scalar_prefetch = 0 : i64, scratch_operands = 0 : i64, tpu.core_type = #tpu.core_type<tc>, window_params = [{transform_indices = @transform_0, window_bounds = array<i64: 16, 32>}, {transform_indices = @transform_1, window_bounds = array<i64: 1, 8, 32>}]} {
    %c0_i32 = arith.constant 0 : i32
    %0 = arith.cmpi eq, %arg1, %c0_i32 : i32
    %1 = arith.extui %0 : i1 to i32
    %c0_i32_0 = arith.constant 0 : i32
    %2 = arith.cmpi ne, %1, %c0_i32_0 : i32
    scf.if %2 {
      %cst_10 = arith.constant 0.000000e+00 : f32
      %25 = vector.broadcast %cst_10 : f32 to vector<1x8x32xf32>
      %c0_11 = arith.constant 0 : index
      %c0_12 = arith.constant 0 : index
      %c0_13 = arith.constant 0 : index
      %26 = vector.load %arg3[%c0_11, %c0_12, %c0_13] : memref<1x8x32xf32, #tpu.memory_space<vmem>>, vector<1x8x32xf32>
      tpu.vector_store %arg3[%c0_11, %c0_12, %c0_13], %25 {strides = array<i32>} : memref<1x8x32xf32, #tpu.memory_space<vmem>>, vector<1x8x32xf32>,
    } else {
    }
    %c0 = arith.constant 0 : index
    %c0_1 = arith.constant 0 : index
    %3 = vector.load %arg2[%c0, %c0_1] : memref<16x32xf32, #tpu.memory_space<vmem>>, vector<16x32xf32>
    %c1_i32 = arith.constant 1 : i32
    %4 = arith.muli %arg0, %c1_i32 : i32
    %5 = arith.addi %4, %arg1 : i32
    %6 = tpu.iota {dimensions = array<i32: 0>} : vector<16x1xi32>
    %c16_i32 = arith.constant 16 : i32
    %7 = arith.muli %5, %c16_i32 : i32
    %8 = vector.broadcast %7 : i32 to vector<16x1xi32>
    %9 = arith.addi %8, %6 : vector<16x1xi32>
    %c16_i32_2 = arith.constant 16 : i32
    %10 = vector.broadcast %c16_i32_2 : i32 to vector<16x1xi32>
    %11 = arith.cmpi slt, %9, %10 : vector<16x1xi32>
    %cst = arith.constant 0.000000e+00 : f32
    %12 = vector.shape_cast %11 : vector<16x1xi1> to vector<16x1xi1>
    %13 = vector.broadcast %12 : vector<16x1xi1> to vector<16x32xi1>
    %14 = vector.broadcast %cst : f32 to vector<16x32xf32>
    %15 = arith.select %13, %3, %14 : vector<16x32xi1>, vector<16x32xf32>
    %16 = math.absf %15 : vector<16x32xf32>
    %17 = arith.mulf %16, %16 : vector<16x32xf32>
    %18 = arith.mulf %17, %16 : vector<16x32xf32>
    %19 = vector.shape_cast %18 : vector<16x32xf32> to vector<2x8x32xf32>
    %cst_3 = arith.constant dense<0.000000e+00> : vector<8x32xf32>
    %20 = vector.multi_reduction <add>, %19, %cst_3 [0] : vector<2x8x32xf32> to vector<8x32xf32>
    %c0_4 = arith.constant 0 : index
    %c0_5 = arith.constant 0 : index
    %c0_6 = arith.constant 0 : index
    %21 = vector.load %arg3[%c0_4, %c0_5, %c0_6] : memref<1x8x32xf32, #tpu.memory_space<vmem>>, vector<1x8x32xf32>
    %22 = vector.shape_cast %20 : vector<8x32xf32> to vector<1x8x32xf32>
    %23 = arith.addf %21, %22 : vector<1x8x32xf32>
    %c0_7 = arith.constant 0 : index
    %c0_8 = arith.constant 0 : index
    %c0_9 = arith.constant 0 : index
    %24 = vector.load %arg3[%c0_7, %c0_8, %c0_9] : memref<1x8x32xf32, #tpu.memory_space<vmem>>, vector<1x8x32xf32>
    tpu.vector_store %arg3[%c0_7, %c0_8, %c0_9], %23 {strides = array<i32>} : memref<1x8x32xf32, #tpu.memory_space<vmem>>, vector<1x8x32xf32>,
    return
  }
  func.func @transform_0(%arg0: i32, %arg1: i32) -> (i32, i32) {
    %c1_i32 = arith.constant 1 : i32
    %0 = arith.muli %arg0, %c1_i32 : i32
    %1 = arith.addi %0, %arg1 : i32
    %c0_i32 = arith.constant 0 : i32
    %2 = arith.minsi %1, %c0_i32 : i32
    %c0_i32_0 = arith.constant 0 : i32
    %c0_i32_1 = arith.constant 0 : i32
    return %2, %c0_i32_0 : i32, i32
  }
  func.func @transform_1(%arg0: i32, %arg1: i32) -> (i32, i32, i32) {
    %c0_i32 = arith.constant 0 : i32
    %c0_i32_0 = arith.constant 0 : i32
    %c0_i32_1 = arith.constant 0 : i32
    return %arg0, %c0_i32, %c0_i32_0 : i32, i32, i32
  }
}

</mosaic_0001>

<bundles_post_ra>
// kernel: tpu_custom_call.1
= control target key start
LH: loop header
LB: loop body
LE: loop exit
PB: predicated region body
PF: predicated region fallthrough
CT: control target
= control target key end

     0   :  { %6 = vsyncpa [#allocation3], 0  ;;  %s183_s0 = inlined_call_operand.hbm [shape: f32[16,32], index: 0, kind: input, shape index: {}]   ;;  %s184_s1 = inlined_call_operand.hbm [shape: f32[1,8,32], index: 1, kind: output, shape index: {}]  }
   0x1   :  { %7 = vsyncpa [#allocation4], 0  ;;  %s140_s6 = smov [#allocation2]   ;;  %s92_s10 = scalar_lea.hbm %s183_s0, 256 }
   0x2   :  { %s19_s7 = sshll.u32 %s140_s6, 4  ;;  %p93_p0 = scmp.ne.s32.totalorder %s183_s0, %s92_s10  ;;  %s20_s7 = int_to_ptr.vmem [resolvable:$true] %s19_s7 }
   0x3   :  { %p96_p1 = scmp.lt.u32.totalorder %s92_s10, %s183_s0 }
   0x5   :  { %p98_p2 = pnand %p96_p1, %p93_p0 }
   0x7   :  { %101 = shalt.err (!%p98_p2)
}
   0x8   :  { %s102_s15 = scalar_lea.vmem %s20_s7, 256  ;;  %p107_p4 = scmp.lt.s32.totalorder %s20_s7, %s20_s7 }
   0x9   :  { %p103_p3 = scmp.ne.s32.totalorder %s20_s7, %s102_s15  ;;  %p108_p5 = scmp.lt.s32.totalorder %s102_s15, %s102_s15 }
   0xb   :  { %p109_p6 = por %p108_p5, %p107_p4 }
   0xd   :  { %p110_p7 = pnand %p109_p6, %p103_p3 }
   0xf   :  { %113 = shalt.err (!%p110_p7)
}
  0x10   :  { %s141_s16 = smov 128   ;;  %s142_s17 = smov 8  }
  0x11   :  { %25 = dma.hbm_to_vmem [thread:$0]  %s183_s0, 256, %s20_s7, [#allocation3], %s141_s16, %s141_s16, %s142_s17  }
  0x12   :  { %136 = dma.done.wait [#allocation3], 256  }
  0x13   :  { %137 = vsyncadd [#allocation3], 4294967040  ;;  %vm37_vm0 = vcmask 261120   ;;  %v143_v0 = vmov 0.0   ;;  %v39_v1 = vld [vmem:[#allocation2] sm:$0xff]  ;;  %v40_v2 = vld [vmem:[#allocation2 + $0x8] sm:$0xff] }
  0x14   :  { %38 = vst.msk [vmem:[#allocation5] sm:$0xff] %vm37_vm0, %v143_v0  ;;  %v57_v3 = vand.u32 2147483647, %v39_v1  ;;  %v58_v4 = vand.u32 2147483647, %v40_v2  ;;  %s144_s0 = smov [#allocation5]  }
  0x15   :  { %s76_s20 = sshll.u32 %s144_s0, 4  ;;  %s77_s20 = int_to_ptr.vmem [resolvable:$true] %s76_s20 }
  0x16   :  { %v59_v5 = vmul.f32 %v57_v3, %v57_v3  ;;  %v60_v6 = vmul.f32 %v58_v4, %v58_v4  ;;  %s114_s21 = scalar_lea.vmem %s77_s20, 128  ;;  %p119_p9 = scmp.lt.s32.totalorder %s77_s20, %s77_s20 }
  0x17   :  { %p115_p8 = scmp.ne.s32.totalorder %s77_s20, %s114_s21  ;;  %p120_p10 = scmp.lt.s32.totalorder %s114_s21, %s114_s21 }
  0x18   :  { %v61_v7 = vmul.f32 %v59_v5, %v57_v3  ;;  %v62_v8 = vmul.f32 %v60_v6, %v58_v4 }
  0x19   :  { %p121_p11 = por %p120_p10, %p119_p9 }
  0x1a   :  { %v64_v9 = vsel %vm37_vm0, %v61_v7, 0.0  ;;  %v65_v10 = vsel %vm37_vm0, %v62_v8, 0.0 }
  0x1b   :  { %v67_v11 = vld [vmem:[#allocation5] sm:$0xff]  ;;  %v66_v12 = vadd.f32 %v65_v10, %v64_v9  ;;  %p122_p12 = pnand %p121_p11, %p115_p8 }
  0x1d   :  { %v68_v13 = vadd.f32 %v67_v11, %v66_v12 }
  0x1f   :  { %69 = vst.msk [vmem:[#allocation5] sm:$0xff] %vm37_vm0, %v68_v13 }
  0x20   :  { %125 = shalt.err (!%p122_p12)
}
  0x21   :  { %s126_s24 = scalar_lea.hbm %s184_s1, 128 }
  0x22   :  { %p127_p13 = scmp.ne.s32.totalorder %s184_s1, %s126_s24  ;;  %p130_p0 = scmp.lt.u32.totalorder %s126_s24, %s184_s1 }
  0x24   :  { %p132_p1 = pnand %p130_p0, %p127_p13 }
  0x26   :  { %135 = shalt.err (!%p132_p1)
}
  0x27   :  { %79 = dma.vmem_to_hbm [thread:$0]  %s77_s20, 128, %s184_s1, [#allocation4]  }
  0x28   :  { %138 = dma.done.wait [#allocation4], 128  }
  0x29   :  { %139 = vsyncadd [#allocation4], 4294967168 }
  0x2a   :  { %83 = vsyncpa [#allocation3], 1 }
  0x2b   :  { %84 = vsyncpa [#allocation4], 1 }

</bundles_post_ra>
